<compile_context>
chip_gen: v5e
topology: v5e:2x2
jax: 0.10.0
libtpu: 0.0.40
codegen_flags: <defaults>
</compile_context>

<pallas_src>
import functools

import jax
import jax.numpy as jnp
from jax.experimental import pallas as pl
from jax.experimental.pallas import tpu as pltpu

_LANE = 128


def _round_up(x: int, m: int) -> int:
    return ((x + m - 1) // m) * m


@functools.lru_cache(maxsize=1)
def _vmem_budget_bytes() -> int:
    """Per-call VMEM budget, leaving headroom under the physical capacity."""
    cap = 64 * 1024 * 1024  # conservative default (v7x physical VMEM)
    try:
        cap = int(pltpu.get_tpu_info().vmem_capacity_bytes)
    except Exception:
        pass
    # v7x (64 MiB) -> ~40 MiB; v5e/v6e (128 MiB) -> 96 MiB.
    return int(min(max(cap - 24 * 1024 * 1024, 32 * 1024 * 1024), 96 * 1024 * 1024))


def prepare_params(w, b, *, compute_dtype=jnp.bfloat16):
    """Pad + cast the Linear parameters ONCE, outside the per-call hot path.

    w: [K, H] (= PyTorch nn.Linear weight.T, K = input_dim1 + input_dim2)
    b: [H]
    Returns (w_p [K_pad, H_pad] compute_dtype, b_p [1, H_pad] float32).
    """
    K, H = w.shape
    # Very large contraction dims are padded to a lane multiple so the forward
    # pass can K-tile (128-lane constraint on x blocks); small K pays only 16.
    k_q = _LANE if K >= 2048 else 16
    K_pad = _round_up(K, k_q)
    H_pad = _round_up(H, _LANE)
    w_p = jnp.pad(w, ((0, K_pad - K), (0, H_pad - H))).astype(compute_dtype)
    b_p = jnp.pad(b, (0, H_pad - H)).reshape(1, H_pad).astype(jnp.float32)
    return w_p, b_p


def _fused_kernel(x_ref, w_ref, b_ref, o_ref):
    # Single MXU pass over the full (VMEM-resident) contraction dim, f32 accum.
    acc = jnp.dot(x_ref[...], w_ref[...], preferred_element_type=jnp.float32)
    o_ref[...] = jnp.maximum(acc + b_ref[...], 0.0).astype(o_ref.dtype)


def _ktiled_kernel(x_ref, w_ref, b_ref, o_ref, acc_ref):
    # Reduction over the (innermost) K grid axis: accumulate in f32 scratch,
    # apply bias + ReLU once on the final K step.
    @pl.when(pl.program_id(2) == 0)
    def _():
        acc_ref[...] = jnp.zeros_like(acc_ref)

    acc_ref[...] += jnp.dot(x_ref[...], w_ref[...],
                            preferred_element_type=jnp.float32)

    @pl.when(pl.program_id(2) == pl.num_programs(2) - 1)
    def _():
        o_ref[...] = jnp.maximum(acc_ref[...] + b_ref[...], 0.0).astype(o_ref.dtype)


def _select_tiles(B, K_pad, H_pad, in_bytes, out_bytes, budget):
    """Static tile selection. Returns (tm, tn, tk, weight_buffer_count)."""
    # Batch tile: multiple of 16 (bf16 sublane packing), <= 256, near-minimal
    # padding waste; among near-minimal candidates prefer the largest tile.
    tm_cands = list(range(16, 257, 16))
    min_waste = min(_round_up(B, t) - B for t in tm_cands)
    tol = min_waste + max(0, B // 16)
    tm = max(t for t in tm_cands if _round_up(B, t) - B <= tol)
    n_i = _round_up(B, tm) // tm

    def vmem_bytes(tn, tk, wbuf, with_acc):
        return (2 * tm * tk * in_bytes          # x tiles (double-buffered)
                + wbuf * tk * tn * in_bytes     # weight tiles
                + 2 * tn * 4                    # bias tiles
                + 2 * tm * tn * out_bytes       # output tiles
                + (tm * tn * 4 if with_acc else 0))

    # H tile: largest 128-multiple (<= 1024) that divides the padded H.
    tn_cands = [t for t in range(min(H_pad, 8 * _LANE), 0, -_LANE) if H_pad % t == 0]

    # 1) Full-K-resident design (single MXU pass, no accumulator). When the
    #    batch axis loops, try triple-buffering the weight so the next H
    #    tile's weight DMA gets more than one step of prefetch lead.
    for tn in tn_cands:
        for wbuf in ((3, 2) if n_i >= 2 else (2,)):
            if vmem_bytes(tn, K_pad, wbuf, with_acc=False) <= budget:
                return tm, tn, K_pad, wbuf

    # 2) Very large K: K-tiled reduction grid (prepare_params pads such K to a
    #    lane multiple so tk satisfies the 128-lane constraint on x blocks).
    if K_pad % _LANE == 0:
        tk_cands = [t for t in range(K_pad - _LANE, 0, -_LANE) if K_pad % t == 0]
        for tn in tn_cands:
            for tk in tk_cands:
                if vmem_bytes(tn, tk, 2, with_acc=True) <= budget:
                    return tm, tn, tk, 2

    # 3) Fallback: smallest tiles, let the compiler's VMEM limit arbitrate.
    return tm, tn_cands[-1], K_pad, 2


@functools.partial(jax.jit, static_argnames=("hidden_dim", "force_pallas"))
def hidden_layer_forward(x1, x2, w_p, b_p, hidden_dim, force_pallas=False):
    """x1: [B, D1], x2: [B, D2]; (w_p, b_p) from prepare_params(). -> [B, hidden_dim]."""
    B, D1 = x1.shape
    D2 = x2.shape[1]
    K = D1 + D2
    K_pad, H_pad = w_p.shape
    H = hidden_dim
    cdt = w_p.dtype
    out_dtype = x1.dtype
    in_bytes = jnp.dtype(cdt).itemsize
    out_bytes = jnp.dtype(out_dtype).itemsize
    budget = _vmem_budget_bytes()

    tm, tn, tk, w_buffers = _select_tiles(B, K_pad, H_pad, in_bytes, out_bytes, budget)
    B_pad = _round_up(B, tm)
    n_i, n_j, n_k = B_pad // tm, H_pad // tn, K_pad // tk

    # Concat once; weight/bias were padded & cast at parameter-setup time.
    x = jnp.concatenate([x1, x2], axis=1).astype(cdt)

    if (not force_pallas) and n_i == 1 and n_j == 1 and n_k == 1:
        # Tiny single-tile problems: pallas_call launch + tile-padding overhead
        # dominates -- XLA's fused dot is strictly better here.
        out = jnp.dot(x, w_p[:K], preferred_element_type=jnp.float32) + b_p
        return jnp.maximum(out, 0.0).astype(out_dtype)[:, :H]

    # Zero padding contributes nothing to the matmul; padded output rows/cols
    # are sliced off at the end.
    x = jnp.pad(x, ((0, B_pad - B), (0, K_pad - K)))

    flops = 2 * B_pad * K_pad * H_pad + 2 * B_pad * H_pad
    # x is re-read once per H tile; W once (full-K) or once per batch tile (K-tiled).
    bytes_accessed = (B_pad * K_pad * in_bytes * n_j
                      + K_pad * H_pad * in_bytes * (1 if n_k == 1 else n_i)
                      + H_pad * 4
                      + B_pad * H_pad * out_bytes)
    cost = pl.CostEstimate(flops=flops, transcendentals=0,
                           bytes_accessed=bytes_accessed)

    if n_k == 1:
        w_kwargs = dict(pipeline_mode=pl.Buffered(w_buffers)) if w_buffers > 2 else {}
        out_padded = pl.pallas_call(
            _fused_kernel,
            out_shape=jax.ShapeDtypeStruct((B_pad, H_pad), out_dtype),
            # Grid (H tiles, batch tiles): weight/bias blocks depend only on j,
            # so they stay VMEM-resident across the inner batch axis.
            grid=(n_j, n_i),
            in_specs=[
                pl.BlockSpec((tm, K_pad), lambda j, i: (i, 0)),
                pl.BlockSpec((K_pad, tn), lambda j, i: (0, j), **w_kwargs),
                pl.BlockSpec((1, tn), lambda j, i: (0, j)),
            ],
            out_specs=pl.BlockSpec((tm, tn), lambda j, i: (i, j)),
            compiler_params=pltpu.CompilerParams(
                # Megacore (v7x) may only shard the H axis -> the two TCs
                # stream disjoint halves of W instead of duplicating its DMA.
                dimension_semantics=("parallel", "arbitrary"),
                vmem_limit_bytes=budget,
            ),
            cost_estimate=cost,
        )(x, w_p, b_p)
    else:
        out_padded = pl.pallas_call(
            _ktiled_kernel,
            out_shape=jax.ShapeDtypeStruct((B_pad, H_pad), out_dtype),
            grid=(n_j, n_i, n_k),  # reduction axis last
            in_specs=[
                pl.BlockSpec((tm, tk), lambda j, i, k: (i, k)),
                pl.BlockSpec((tk, tn), lambda j, i, k: (k, j)),
                pl.BlockSpec((1, tn), lambda j, i, k: (0, j)),
            ],
            out_specs=pl.BlockSpec((tm, tn), lambda j, i, k: (i, j)),
            scratch_shapes=[pltpu.VMEM((tm, tn), jnp.float32)],
            compiler_params=pltpu.CompilerParams(
                dimension_semantics=("parallel", "arbitrary", "arbitrary"),
                vmem_limit_bytes=budget,
            ),
            cost_estimate=cost,
        )(x, w_p, b_p)

    # Load-bearing slice: padded output rows contain relu(bias), not zeros.
    return out_padded[:B, :H]


if __name__ == "__main__":
    # Small shapes consistent with the module's forward:
    # input_1: [B, input_dim1], input_2: [B, input_dim2], hidden_dim = H.
    B, D1, D2, H = 2, 4, 4, 32

    key = jax.random.PRNGKey(0)
    k1, k2, kw, kb = jax.random.split(key, 4)

    x1 = jax.random.normal(k1, (B, D1), dtype=jnp.float32)
    x2 = jax.random.normal(k2, (B, D2), dtype=jnp.float32)

    # Deterministic nn.Linear-style init: U(-1/sqrt(fan_in), 1/sqrt(fan_in)).
    fan_in = D1 + D2
    bound = float(fan_in) ** -0.5
    # PyTorch weight is [H, D_in]; we store its transpose [D_in, H].
    w = jax.random.uniform(kw, (fan_in, H), jnp.float32, -bound, bound)
    b = jax.random.uniform(kb, (H,), jnp.float32, -bound, bound)

    # Pure-JAX reference of the PyTorch semantics.
    ref = jnp.maximum(jnp.concatenate([x1, x2], axis=1) @ w + b, 0.0)

    # 1) f32 Pallas path (exact check).
    w32, b32 = prepare_params(w, b, compute_dtype=jnp.float32)
    out32 = jax.block_until_ready(
        hidden_layer_forward(x1, x2, w32, b32, hidden_dim=H, force_pallas=True))
    assert out32.shape == (B, H)
    assert jnp.allclose(out32, ref, atol=1e-5, rtol=1e-5)

    # 2) Production default: bf16-streamed weights, f32 accumulation.
    wbf, bbf = prepare_params(w, b)
    outbf = jax.block_until_ready(
        hidden_layer_forward(x1, x2, wbf, bbf, hidden_dim=H, force_pallas=True))
    assert outbf.shape == (B, H)
    assert jnp.allclose(outbf, ref, atol=3e-2, rtol=3e-2)

    # 3) Fast-path dispatch (tiny single-tile problems skip pallas_call).
    outfast = jax.block_until_ready(
        hidden_layer_forward(x1, x2, wbf, bbf, hidden_dim=H))
    assert jnp.allclose(outfast, ref, atol=3e-2, rtol=3e-2)

    print("KERNEL_OK")
</pallas_src>

<mosaic_0001>
module attributes {stable_mosaic.version = 11 : i64} {
  func.func @_fused_kernel(%arg0: i32, %arg1: i32, %arg2: memref<16x16xf32, #tpu.memory_space<vmem>>, %arg3: memref<16x128xf32, #tpu.memory_space<vmem>>, %arg4: memref<1x128xf32, #tpu.memory_space<vmem>>, %arg5: memref<16x128xf32, #tpu.memory_space<vmem>>) attributes {dimension_semantics = [#tpu.dimension_semantics<parallel>, #tpu.dimension_semantics<arbitrary>], iteration_bounds = array<i64: 1, 1>, scalar_prefetch = 0 : i64, scratch_operands = 0 : i64, tpu.core_type = #tpu.core_type<tc>, window_params = [{transform_indices = @transform_0, window_bounds = array<i64: 16, 16>}, {transform_indices = @transform_1, window_bounds = array<i64: 16, 128>}, {transform_indices = @transform_2, window_bounds = array<i64: 1, 128>}, {transform_indices = @transform_3, window_bounds = array<i64: 16, 128>}]} {
    %c0 = arith.constant 0 : index
    %c0_0 = arith.constant 0 : index
    %0 = vector.load %arg2[%c0, %c0_0] : memref<16x16xf32, #tpu.memory_space<vmem>>, vector<16x16xf32>
    %c0_1 = arith.constant 0 : index
    %c0_2 = arith.constant 0 : index
    %1 = vector.load %arg3[%c0_1, %c0_2] : memref<16x128xf32, #tpu.memory_space<vmem>>, vector<16x128xf32>
    %cst = arith.constant dense<0.000000e+00> : vector<16x128xf32>
    %2 = tpu.matmul %0, %1, %cst {dimension_numbers = #tpu.dot_dimension_numbers<[1], [0], [0], [1], [0, 0, 1, 1], [], []>} : vector<16x16xf32>, vector<16x128xf32>, vector<16x128xf32> -> vector<16x128xf32>
    %c0_3 = arith.constant 0 : index
    %c0_4 = arith.constant 0 : index
    %3 = vector.load %arg4[%c0_3, %c0_4] : memref<1x128xf32, #tpu.memory_space<vmem>>, vector<1x128xf32>
    %4 = vector.broadcast %3 : vector<1x128xf32> to vector<16x128xf32>
    %5 = arith.addf %2, %4 : vector<16x128xf32>
    %cst_5 = arith.constant 0.000000e+00 : f32
    %6 = vector.broadcast %cst_5 : f32 to vector<16x128xf32>
    %7 = arith.maximumf %5, %6 : vector<16x128xf32>
    %c0_6 = arith.constant 0 : index
    %c0_7 = arith.constant 0 : index
    %8 = vector.load %arg5[%c0_6, %c0_7] : memref<16x128xf32, #tpu.memory_space<vmem>>, vector<16x128xf32>
    tpu.vector_store %arg5[%c0_6, %c0_7], %7 {strides = array<i32>} : memref<16x128xf32, #tpu.memory_space<vmem>>, vector<16x128xf32>,
    return
  }
  func.func @transform_0(%arg0: i32, %arg1: i32) -> (i32, i32) {
    %c0_i32 = arith.constant 0 : i32
    %c0_i32_0 = arith.constant 0 : i32
    return %arg1, %c0_i32 : i32, i32
  }
  func.func @transform_1(%arg0: i32, %arg1: i32) -> (i32, i32) {
    %c0_i32 = arith.constant 0 : i32
    %c0_i32_0 = arith.constant 0 : i32
    return %c0_i32, %arg0 : i32, i32
  }
  func.func @transform_2(%arg0: i32, %arg1: i32) -> (i32, i32) {
    %c0_i32 = arith.constant 0 : i32
    %c0_i32_0 = arith.constant 0 : i32
    return %c0_i32, %arg0 : i32, i32
  }
  func.func @transform_3(%arg0: i32, %arg1: i32) -> (i32, i32) {
    %c0_i32 = arith.constant 0 : i32
    return %arg1, %arg0 : i32, i32
  }
}

</mosaic_0001>

<bundles_post_ra>
// kernel: hidden_layer_forward.1
= control target key start
LH: loop header
LB: loop body
LE: loop exit
PB: predicated region body
PF: predicated region fallthrough
CT: control target
= control target key end

     0   :  { %vm22_vm0 = vcmask 130048   ;;  %s106_s1 = inlined_call_operand.vmem [shape: f32[16,128], index: 1, kind: input, shape index: {}]   ;;  %s107_s0 = inlined_call_operand.vmem [shape: f32[16,16], index: 0, kind: input, shape index: {}]   ;;  %s108_s2 = inlined_call_operand.vmem [shape: f32[1,128], index: 2, kind: input, shape index: {}]   ;;  %s109_s3 = inlined_call_operand.vmem [shape: f32[16,128], index: 3, kind: output, shape index: {}]  }
   0x1   :  { %v17_v0 = vld [vmem:[%s106_s1 + $0x8] sm:$0xff]  ;;  %v16_v1 = vld [vmem:[%s106_s1] sm:$0xff] }
   0x2   :  { %43 = vmatpush.msra.mxu0 %v17_v0  ;;  %62 = vmatpush.msra.mxu1 %v17_v0  ;;  %v14_v2 = vld [vmem:[%s107_s0] sm:$0xff]  ;;  %v15_v3 = vld [vmem:[%s107_s0 + $0x8] sm:$0xff] }
   0x3   :  { %v64_v4 = vld [vmem:[%s108_s2] ss:$0 sm:$0xff] }
   0x4   :  { %44 = vmatpush.msra.mxu0 %v16_v1  ;;  %63 = vmatpush.msra.mxu1 %v16_v1 }
   0x5   :  { %60 = vmatmul.msk.f32.vlgmr.msra.gmra.mxu0 %vm22_vm0, %v14_v2  ;;  %61 = vmatmul.msk.f32.vlgmr.msra.gmra.mxu1 %vm22_vm0, %v15_v3 }
  0x82   :  { %v46_v5 = vpop.f32.mrf.mxu0  ;;  %v49_v6 = vpop.f32.mrf.mxu1 }
  0x83   :  { %v47_v7 = vadd.f32 %v64_v4, %v46_v5  ;;  %v50_v8 = vadd.f32 %v64_v4, %v49_v6 }
  0x85   :  { %v52_v9 = vmax.f32 %v47_v7, 0.0  ;;  %v53_v10 = vmax.f32 %v50_v8, 0.0 }
  0x87   :  { %54 = vst [vmem:[%s109_s3] sm:$0xff] %v52_v9 }
  0x88   :  { %55 = vst [vmem:[%s109_s3 + $0x8] sm:$0xff] %v53_v10 }

</bundles_post_ra>
